<compile_context>
chip_gen: v7x
topology: tpu7x:2x2x1
jax: 0.10.0
libtpu: 0.0.40
codegen_flags: <defaults>
</compile_context>

<pallas_src>
import functools

import jax
import jax.numpy as jnp
from jax.experimental import pallas as pl
from jax.experimental.pallas import tpu as pltpu


def _round_up(a: int, b: int) -> int:
    return (a + b - 1) // b * b


def _ffn_kernel(seed_ref, x_ref, w1_ref, b1_ref, w2_ref, b2_ref, o_ref,
                acc_ref, *, d_ff: int, dropout_p: float, keep_threshold: int):
    # x_ref : (tm, d_model)      w1_ref: (d_model, tf)   b1_ref: (1, tf)
    # w2_ref: (tf, d_model)      b2_ref: (1, d_model)    o_ref : (tm, d_model)
    # acc_ref: VMEM (tm, d_model) f32 accumulator, resident across the j axis.
    j = pl.program_id(1)

    @pl.when(j == 0)
    def _init():
        acc_ref[...] = jnp.zeros_like(acc_ref)

    x = x_ref[...]

    # linear_1 chunk + ReLU (MXU matmul, f32 accumulation)
    h = jnp.dot(x, w1_ref[...], preferred_element_type=jnp.float32)
    h = h + b1_ref[...].astype(jnp.float32)
    h = jnp.maximum(h, 0.0)

    # dropout (inverted dropout). Stateless hash of (global element index,
    # seed) -> uint32; keep iff bits >= threshold (threshold = p * 2^32).
    if dropout_p > 0.0:
        tm, tf = h.shape
        row = jax.lax.broadcasted_iota(jnp.int32, (tm, tf), 0)
        col = jax.lax.broadcasted_iota(jnp.int32, (tm, tf), 1)
        row = row + pl.program_id(0) * tm
        col = col + j * tf
        idx = row * d_ff + col                      # int32 (wrap ok for hash)
        u = idx.astype(jnp.uint32)
        seed_u = seed_ref[0].astype(jnp.uint32)
        u = u ^ (seed_u * jnp.uint32(0x9E3779B9))
        # 32-bit integer mix (splitmix-style finalizer), pure VPU ops.
        u = u ^ (u >> 16)
        u = u * jnp.uint32(0x7FEB352D)
        u = u ^ (u >> 15)
        u = u * jnp.uint32(0x846CA68B)
        u = u ^ (u >> 16)
        keep = u >= jnp.uint32(keep_threshold)
        h = jnp.where(keep, h * jnp.float32(1.0 / (1.0 - dropout_p)),
                      jnp.float32(0.0))

    # linear_2 chunk: accumulate into the resident f32 accumulator.
    acc_ref[...] += jnp.dot(h.astype(w2_ref.dtype), w2_ref[...],
                            preferred_element_type=jnp.float32)

    @pl.when(j == pl.num_programs(1) - 1)
    def _finalize():
        y = acc_ref[...] + b2_ref[...].astype(jnp.float32)
        o_ref[...] = y.astype(o_ref.dtype)


def feed_forward_block(x, w1, b1, w2, b2, *, dropout_p=0.0, seed=0,
                       tm=256, tf=512):
    """x: (B, S, d_model) -> (B, S, d_model).  dropout_p in [0, 1)."""
    assert 0.0 <= dropout_p < 1.0
    B, S, d_model = x.shape
    d_ff = w1.shape[1]
    assert w1.shape == (d_model, d_ff)
    assert w2.shape == (d_ff, d_model)

    M = B * S

    # Token tile: multiple of 8, clamped for tiny inputs, padded otherwise.
    tm = max(8, min(tm, _round_up(M, 8)))
    tm = _round_up(tm, 8)
    Mp = _round_up(M, tm)

    # d_ff tile: must be a multiple of 128 (lane dim) or the full extent.
    tf_eff = d_ff
    if d_ff > tf and d_ff % 128 == 0:
        for cand in range(min(tf, d_ff), 0, -128):
            if d_ff % cand == 0:
                tf_eff = cand
                break

    x2 = x.reshape(M, d_model)
    if Mp != M:
        x2 = jnp.pad(x2, ((0, Mp - M), (0, 0)))

    keep_threshold = min(int(round(dropout_p * (1 << 32))), (1 << 32) - 1)
    kernel = functools.partial(_ffn_kernel, d_ff=d_ff,
                               dropout_p=float(dropout_p),
                               keep_threshold=keep_threshold)

    grid = (Mp // tm, d_ff // tf_eff)

    out = pl.pallas_call(
        kernel,
        out_shape=jax.ShapeDtypeStruct((Mp, d_model), x.dtype),
        grid_spec=pltpu.PrefetchScalarGridSpec(
            num_scalar_prefetch=1,                   # seed -> SMEM
            grid=grid,
            in_specs=[
                pl.BlockSpec((tm, d_model), lambda i, j, s: (i, 0)),    # x
                pl.BlockSpec((d_model, tf_eff), lambda i, j, s: (0, j)),  # W1
                pl.BlockSpec((1, tf_eff), lambda i, j, s: (0, j)),        # b1
                pl.BlockSpec((tf_eff, d_model), lambda i, j, s: (j, 0)),  # W2
                pl.BlockSpec((1, d_model), lambda i, j, s: (0, 0)),       # b2
            ],
            out_specs=pl.BlockSpec((tm, d_model), lambda i, j, s: (i, 0)),
            scratch_shapes=[pltpu.VMEM((tm, d_model), jnp.float32)],
        ),
        compiler_params=pltpu.CompilerParams(
            dimension_semantics=("parallel", "arbitrary"),
            vmem_limit_bytes=64 * 1024 * 1024,
        ),
    )(jnp.array([seed], jnp.int32), x2, w1,
      b1.reshape(1, d_ff), w2, b2.reshape(1, d_model))

    return out[:M].reshape(B, S, d_model)


def init_params(key, d_model, d_ff, dtype=jnp.float32):
    """Deterministic nn.Linear-style init (uniform +/- 1/sqrt(fan_in))."""
    k1, k2, k3, k4 = jax.random.split(key, 4)
    lim1 = 1.0 / (d_model ** 0.5)
    lim2 = 1.0 / (d_ff ** 0.5)
    w1 = jax.random.uniform(k1, (d_model, d_ff), dtype, -lim1, lim1)
    b1 = jax.random.uniform(k2, (d_ff,), dtype, -lim1, lim1)
    w2 = jax.random.uniform(k3, (d_ff, d_model), dtype, -lim2, lim2)
    b2 = jax.random.uniform(k4, (d_model,), dtype, -lim2, lim2)
    return w1, b1, w2, b2


if __name__ == "__main__":
    B, S, d_model, d_ff = 2, 8, 32, 64
    dropout = 0.1

    key = jax.random.PRNGKey(0)
    kx, kp = jax.random.split(key)
    x = jax.random.normal(kx, (B, S, d_model), jnp.float32)
    w1, b1, w2, b2 = init_params(kp, d_model, d_ff)

    # Training-mode forward (dropout active, in-kernel stateless hash PRNG).
    y = feed_forward_block(x, w1, b1, w2, b2, dropout_p=dropout, seed=0)
    jax.block_until_ready(y)
    assert y.shape == (B, S, d_model)

    # Eval-mode forward (dropout = identity) checked against pure JAX.
    y_eval = feed_forward_block(x, w1, b1, w2, b2, dropout_p=0.0)
    ref = jnp.maximum(x @ w1 + b1, 0.0) @ w2 + b2
    jax.block_until_ready(y_eval)
    assert jnp.allclose(y_eval, ref, atol=1e-5, rtol=1e-5)

    print("KERNEL_OK")
</pallas_src>

<mosaic_0001>
module attributes {stable_mosaic.version = 11 : i64} {
  func.func @_ffn_kernel(%arg0: i32, %arg1: i32, %arg2: memref<1xi32, #tpu.memory_space<smem>>, %arg3: memref<16x32xf32, #tpu.memory_space<vmem>>, %arg4: memref<32x64xf32, #tpu.memory_space<vmem>>, %arg5: memref<1x64xf32, #tpu.memory_space<vmem>>, %arg6: memref<64x32xf32, #tpu.memory_space<vmem>>, %arg7: memref<1x32xf32, #tpu.memory_space<vmem>>, %arg8: memref<16x32xf32, #tpu.memory_space<vmem>>, %arg9: memref<16x32xf32, #tpu.memory_space<vmem>>) attributes {dimension_semantics = [#tpu.dimension_semantics<parallel>, #tpu.dimension_semantics<arbitrary>], iteration_bounds = array<i64: 1, 1>, scalar_prefetch = 1 : i64, scratch_operands = 1 : i64, tpu.core_type = #tpu.core_type<tc>, window_params = [{transform_indices = @transform_0, window_bounds = array<i64: 16, 32>}, {transform_indices = @transform_1, window_bounds = array<i64: 32, 64>}, {transform_indices = @transform_2, window_bounds = array<i64: 1, 64>}, {transform_indices = @transform_3, window_bounds = array<i64: 64, 32>}, {pipeline_mode = #tpu.pipeline_mode<synchronous>, transform_indices = @transform_4, window_bounds = array<i64: 1, 32>}, {transform_indices = @transform_5, window_bounds = array<i64: 16, 32>}]} {
    %c0_i32 = arith.constant 0 : i32
    %0 = arith.cmpi eq, %arg1, %c0_i32 : i32
    %1 = arith.extui %0 : i1 to i32
    %c0_i32_0 = arith.constant 0 : i32
    %2 = arith.cmpi ne, %1, %c0_i32_0 : i32
    scf.if %2 {
      %cst_22 = arith.constant 0.000000e+00 : f32
      %53 = vector.broadcast %cst_22 : f32 to vector<16x32xf32>
      %c0_23 = arith.constant 0 : index
      %c0_24 = arith.constant 0 : index
      %54 = vector.load %arg9[%c0_23, %c0_24] : memref<16x32xf32, #tpu.memory_space<vmem>>, vector<16x32xf32>
      tpu.vector_store %arg9[%c0_23, %c0_24], %53 {strides = array<i32>} : memref<16x32xf32, #tpu.memory_space<vmem>>, vector<16x32xf32>,
    } else {
    }
    %c0 = arith.constant 0 : index
    %c0_1 = arith.constant 0 : index
    %3 = vector.load %arg3[%c0, %c0_1] : memref<16x32xf32, #tpu.memory_space<vmem>>, vector<16x32xf32>
    %c0_2 = arith.constant 0 : index
    %c0_3 = arith.constant 0 : index
    %4 = vector.load %arg4[%c0_2, %c0_3] : memref<32x64xf32, #tpu.memory_space<vmem>>, vector<32x64xf32>
    %cst = arith.constant dense<0.000000e+00> : vector<16x64xf32>
    %5 = tpu.matmul %3, %4, %cst {dimension_numbers = #tpu.dot_dimension_numbers<[1], [0], [0], [1], [0, 0, 1, 1], [], []>} : vector<16x32xf32>, vector<32x64xf32>, vector<16x64xf32> -> vector<16x64xf32>
    %c0_4 = arith.constant 0 : index
    %c0_5 = arith.constant 0 : index
    %6 = vector.load %arg5[%c0_4, %c0_5] : memref<1x64xf32, #tpu.memory_space<vmem>>, vector<1x64xf32>
    %7 = vector.broadcast %6 : vector<1x64xf32> to vector<16x64xf32>
    %8 = arith.addf %5, %7 : vector<16x64xf32>
    %cst_6 = arith.constant 0.000000e+00 : f32
    %9 = vector.broadcast %cst_6 : f32 to vector<16x64xf32>
    %10 = arith.maximumf %8, %9 : vector<16x64xf32>
    %11 = tpu.iota {dimensions = array<i32: 0>} : vector<16x64xi32>
    %12 = tpu.iota {dimensions = array<i32: 1>} : vector<16x64xi32>
    %c16_i32 = arith.constant 16 : i32
    %13 = arith.muli %arg0, %c16_i32 : i32
    %14 = vector.broadcast %13 : i32 to vector<16x64xi32>
    %15 = arith.addi %11, %14 : vector<16x64xi32>
    %c64_i32 = arith.constant 64 : i32
    %16 = arith.muli %arg1, %c64_i32 : i32
    %17 = vector.broadcast %16 : i32 to vector<16x64xi32>
    %18 = arith.addi %12, %17 : vector<16x64xi32>
    %c64_i32_7 = arith.constant 64 : i32
    %19 = vector.broadcast %c64_i32_7 : i32 to vector<16x64xi32>
    %20 = arith.muli %15, %19 : vector<16x64xi32>
    %21 = arith.addi %20, %18 : vector<16x64xi32>
    %c0_8 = arith.constant 0 : index
    %22 = memref.load %arg2[%c0_8] : memref<1xi32, #tpu.memory_space<smem>>
    %c-1640531527_i32 = arith.constant -1640531527 : i32
    %23 = arith.muli %22, %c-1640531527_i32 : i32
    %24 = vector.broadcast %23 : i32 to vector<16x64xi32>
    %25 = arith.xori %21, %24 : vector<16x64xi32>
    %c16_i32_9 = arith.constant 16 : i32
    %26 = vector.broadcast %c16_i32_9 : i32 to vector<16x64xi32>
    %27 = arith.shrui %25, %26 : vector<16x64xi32>
    %28 = arith.xori %25, %27 : vector<16x64xi32>
    %c2146121005_i32 = arith.constant 2146121005 : i32
    %29 = vector.broadcast %c2146121005_i32 : i32 to vector<16x64xi32>
    %30 = arith.muli %28, %29 : vector<16x64xi32>
    %c15_i32 = arith.constant 15 : i32
    %31 = vector.broadcast %c15_i32 : i32 to vector<16x64xi32>
    %32 = arith.shrui %30, %31 : vector<16x64xi32>
    %33 = arith.xori %30, %32 : vector<16x64xi32>
    %c-2073254261_i32 = arith.constant -2073254261 : i32
    %34 = vector.broadcast %c-2073254261_i32 : i32 to vector<16x64xi32>
    %35 = arith.muli %33, %34 : vector<16x64xi32>
    %c16_i32_10 = arith.constant 16 : i32
    %36 = vector.broadcast %c16_i32_10 : i32 to vector<16x64xi32>
    %37 = arith.shrui %35, %36 : vector<16x64xi32>
    %38 = arith.xori %35, %37 : vector<16x64xi32>
    %c429496730_i32 = arith.constant 429496730 : i32
    %39 = vector.broadcast %c429496730_i32 : i32 to vector<16x64xi32>
    %40 = arith.cmpi uge, %38, %39 : vector<16x64xi32>
    %cst_11 = arith.constant 1.11111116 : f32
    %41 = vector.broadcast %cst_11 : f32 to vector<16x64xf32>
    %42 = arith.mulf %10, %41 : vector<16x64xf32>
    %cst_12 = arith.constant 0.000000e+00 : f32
    %43 = vector.broadcast %cst_12 : f32 to vector<16x64xf32>
    %44 = arith.select %40, %42, %43 : vector<16x64xi1>, vector<16x64xf32>
    %c0_13 = arith.constant 0 : index
    %c0_14 = arith.constant 0 : index
    %45 = vector.load %arg9[%c0_13, %c0_14] : memref<16x32xf32, #tpu.memory_space<vmem>>, vector<16x32xf32>
    %c0_15 = arith.constant 0 : index
    %c0_16 = arith.constant 0 : index
    %46 = vector.load %arg6[%c0_15, %c0_16] : memref<64x32xf32, #tpu.memory_space<vmem>>, vector<64x32xf32>
    %cst_17 = arith.constant dense<0.000000e+00> : vector<16x32xf32>
    %47 = tpu.matmul %44, %46, %cst_17 {dimension_numbers = #tpu.dot_dimension_numbers<[1], [0], [0], [1], [0, 0, 1, 1], [], []>} : vector<16x64xf32>, vector<64x32xf32>, vector<16x32xf32> -> vector<16x32xf32>
    %48 = arith.addf %45, %47 : vector<16x32xf32>
    %c0_18 = arith.constant 0 : index
    %c0_19 = arith.constant 0 : index
    %49 = vector.load %arg9[%c0_18, %c0_19] : memref<16x32xf32, #tpu.memory_space<vmem>>, vector<16x32xf32>
    tpu.vector_store %arg9[%c0_18, %c0_19], %48 {strides = array<i32>} : memref<16x32xf32, #tpu.memory_space<vmem>>, vector<16x32xf32>,
    %c0_i32_20 = arith.constant 0 : i32
    %50 = arith.cmpi eq, %arg1, %c0_i32_20 : i32
    %51 = arith.extui %50 : i1 to i32
    %c0_i32_21 = arith.constant 0 : i32
    %52 = arith.cmpi ne, %51, %c0_i32_21 : i32
    scf.if %52 {
      %c0_22 = arith.constant 0 : index
      %c0_23 = arith.constant 0 : index
      %53 = vector.load %arg9[%c0_22, %c0_23] : memref<16x32xf32, #tpu.memory_space<vmem>>, vector<16x32xf32>
      %c0_24 = arith.constant 0 : index
      %c0_25 = arith.constant 0 : index
      %54 = vector.load %arg7[%c0_24, %c0_25] : memref<1x32xf32, #tpu.memory_space<vmem>>, vector<1x32xf32>
      %55 = vector.broadcast %54 : vector<1x32xf32> to vector<16x32xf32>
      %56 = arith.addf %53, %55 : vector<16x32xf32>
      %c0_26 = arith.constant 0 : index
      %c0_27 = arith.constant 0 : index
      %57 = vector.load %arg8[%c0_26, %c0_27] : memref<16x32xf32, #tpu.memory_space<vmem>>, vector<16x32xf32>
      tpu.vector_store %arg8[%c0_26, %c0_27], %56 {strides = array<i32>} : memref<16x32xf32, #tpu.memory_space<vmem>>, vector<16x32xf32>,
    } else {
    }
    return
  }
  func.func @transform_0(%arg0: i32, %arg1: i32, %arg2: memref<1xi32, #tpu.memory_space<smem>>) -> (i32, i32) {
    %c0_i32 = arith.constant 0 : i32
    %c0_i32_0 = arith.constant 0 : i32
    return %arg0, %c0_i32 : i32, i32
  }
  func.func @transform_1(%arg0: i32, %arg1: i32, %arg2: memref<1xi32, #tpu.memory_space<smem>>) -> (i32, i32) {
    %c0_i32 = arith.constant 0 : i32
    %c0_i32_0 = arith.constant 0 : i32
    return %c0_i32, %arg1 : i32, i32
  }
  func.func @transform_2(%arg0: i32, %arg1: i32, %arg2: memref<1xi32, #tpu.memory_space<smem>>) -> (i32, i32) {
    %c0_i32 = arith.constant 0 : i32
    %c0_i32_0 = arith.constant 0 : i32
    return %c0_i32, %arg1 : i32, i32
  }
  func.func @transform_3(%arg0: i32, %arg1: i32, %arg2: memref<1xi32, #tpu.memory_space<smem>>) -> (i32, i32) {
    %c0_i32 = arith.constant 0 : i32
    %c0_i32_0 = arith.constant 0 : i32
    return %arg1, %c0_i32 : i32, i32
  }
  func.func @transform_4(%arg0: i32, %arg1: i32, %arg2: memref<1xi32, #tpu.memory_space<smem>>) -> (i32, i32) {
    %c0_i32 = arith.constant 0 : i32
    %c0_i32_0 = arith.constant 0 : i32
    %c0_i32_1 = arith.constant 0 : i32
    return %c0_i32, %c0_i32_0 : i32, i32
  }
  func.func @transform_5(%arg0: i32, %arg1: i32, %arg2: memref<1xi32, #tpu.memory_space<smem>>) -> (i32, i32) {
    %c0_i32 = arith.constant 0 : i32
    %c0_i32_0 = arith.constant 0 : i32
    return %arg0, %c0_i32 : i32, i32
  }
}

</mosaic_0001>

<bundles_post_ra>
// kernel: tpu_custom_call.1
= control target key start
LH: loop header
LB: loop body
LE: loop exit
PB: predicated region body
PF: predicated region fallthrough
CT: control target
= control target key end

     0   :  { %12 = vsyncpa [#allocation6], 0  ;;  %s736_s0 = inlined_call_operand.<no memory space> [shape: s32[1], index: 0, kind: input, shape index: {}]   ;;  %s737_s1 = inlined_call_operand.hbm [shape: f32[16,32], index: 1, kind: input, shape index: {}]   ;;  %s738_s2 = inlined_call_operand.hbm [shape: f32[32,64], index: 2, kind: input, shape index: {}]   ;;  %s739_s3 = inlined_call_operand.hbm [shape: f32[1,64], index: 3, kind: input, shape index: {}]   ;;  %s740_s4 = inlined_call_operand.hbm [shape: f32[64,32], index: 4, kind: input, shape index: {}]   ;;  %s741_s5 = inlined_call_operand.hbm [shape: f32[1,32], index: 5, kind: input, shape index: {}]   ;;  %s742_s6 = inlined_call_operand.hbm [shape: f32[16,32], index: 6, kind: output, shape index: {}]  }
   0x1   :  { %13 = vsyncpa [#allocation9], 0 }
   0x2   :  { %14 = vsyncpa [#allocation12], 0 }
   0x3   :  { %15 = vsyncpa [#allocation7], 0  ;;  %s590_s21 = smov [#allocation8]   ;;  %s591_s23 = smov [#allocation11]  }
   0x4   :  { %s33_s22 = sshll.u32 %s590_s21, 4  ;;  %s55_s24 = sshll.u32 %s591_s23, 4  ;;  %s34_s22 = int_to_ptr.vmem [resolvable:$true] %s33_s22  ;;  %s634_s24 = int_to_ptr.vmem [resolvable:$true] %s55_s24 }
   0x5   :  { %s450_s27 = scalar_lea.hbm %s738_s2, 512 }
   0x6   :  { %p451_p0 = scmp.ne.s32.totalorder %s738_s2, %s450_s27  ;;  %p454_p1 = scmp.lt.u32.totalorder %s450_s27, %s738_s2 }
   0x8   :  { %p456_p2 = pnand %p454_p1, %p451_p0 }
   0xa   :  { %459 = shalt.err (!%p456_p2)
}
   0xb   :  { %s460_s8 = scalar_lea.vmem %s34_s22, 512  ;;  %p465_p4 = scmp.lt.s32.totalorder %s34_s22, %s34_s22 }
   0xc   :  { %p461_p3 = scmp.ne.s32.totalorder %s34_s22, %s460_s8  ;;  %p466_p5 = scmp.lt.s32.totalorder %s460_s8, %s460_s8 }
   0xe   :  { %p467_p6 = por %p466_p5, %p465_p4 }
  0x10   :  { %p468_p7 = pnand %p467_p6, %p461_p3 }
  0x12   :  { %471 = shalt.err (!%p468_p7)
}
  0x13   :  { %s592_s9 = smov 128   ;;  %s593_s10 = smov 8  }
  0x14   :  { %39 = dma.hbm_to_vmem [thread:$0]  %s738_s2, 512, %s34_s22, [#allocation9], %s592_s9, %s592_s9, %s593_s10  }
  0x15   :  { %s472_s15 = scalar_lea.hbm %s740_s4, 1024 }
  0x16   :  { %p473_p8 = scmp.ne.s32.totalorder %s740_s4, %s472_s15  ;;  %p476_p9 = scmp.lt.u32.totalorder %s472_s15, %s740_s4 }
  0x18   :  { %p478_p10 = pnand %p476_p9, %p473_p8 }
  0x1a   :  { %481 = shalt.err (!%p478_p10)
}
  0x1b   :  { %s482_s20 = scalar_lea.vmem %s634_s24, 1024  ;;  %p487_p12 = scmp.lt.s32.totalorder %s634_s24, %s634_s24 }
  0x1c   :  { %p483_p11 = scmp.ne.s32.totalorder %s634_s24, %s482_s20  ;;  %p488_p13 = scmp.lt.s32.totalorder %s482_s20, %s482_s20 }
  0x1e   :  { %p489_p0 = por %p488_p13, %p487_p12 }
  0x20   :  { %p490_p1 = pnand %p489_p0, %p483_p11 }
  0x22   :  { %493 = shalt.err (!%p490_p1)
}
  0x23   :  { %61 = dma.hbm_to_vmem [thread:$0]  %s740_s4, 1024, %s634_s24, [#allocation12], %s592_s9, %s592_s9, %s593_s10  }
  0x24   :  { %s594_s22 = smov [#allocation5]   ;;  %s595_s25 = smov [#allocation10]  }
  0x25   :  { %s21_s23 = sshll.u32 %s594_s22, 4  ;;  %s46_s26 = sshll.u32 %s595_s25, 4  ;;  %s22_s23 = int_to_ptr.vmem [resolvable:$true] %s21_s23  ;;  %s47_s26 = int_to_ptr.vmem [resolvable:$true] %s46_s26 }
  0x26   :  { %s494_s29 = scalar_lea.hbm %s737_s1, 256 }
  0x27   :  { %p495_p2 = scmp.ne.s32.totalorder %s737_s1, %s494_s29  ;;  %p498_p3 = scmp.lt.u32.totalorder %s494_s29, %s737_s1 }
  0x29   :  { %p500_p4 = pnand %p498_p3, %p495_p2 }
  0x2b   :  { %503 = shalt.err (!%p500_p4)
}
  0x2c   :  { %s504_s4 = scalar_lea.vmem %s22_s23, 256  ;;  %p509_p6 = scmp.lt.s32.totalorder %s22_s23, %s22_s23 }
  0x2d   :  { %p505_p5 = scmp.ne.s32.totalorder %s22_s23, %s504_s4  ;;  %p510_p7 = scmp.lt.s32.totalorder %s504_s4, %s504_s4 }
  0x2f   :  { %p511_p8 = por %p510_p7, %p509_p6 }
  0x31   :  { %p512_p9 = pnand %p511_p8, %p505_p5 }
  0x33   :  { %515 = shalt.err (!%p512_p9)
}
  0x34   :  { %27 = dma.hbm_to_vmem [thread:$0]  %s737_s1, 256, %s22_s23, [#allocation6], %s592_s9, %s592_s9, %s593_s10  }
  0x35   :  { %s516_s15 = scalar_lea.hbm %s739_s3, 16 }
  0x36   :  { %p517_p10 = scmp.ne.s32.totalorder %s739_s3, %s516_s15  ;;  %p520_p11 = scmp.lt.u32.totalorder %s516_s15, %s739_s3 }
  0x38   :  { %p522_p12 = pnand %p520_p11, %p517_p10 }
  0x3a   :  { %525 = shalt.err (!%p522_p12)
}
  0x3b   :  { %s526_s20 = scalar_lea.vmem %s47_s26, 16  ;;  %s530_s2 = scalar_lea.vmem %s47_s26, 32 }
  0x3c   :  { %p527_p13 = scmp.ne.s32.totalorder %s47_s26, %s526_s20  ;;  %p531_p0 = scmp.lt.s32.totalorder %s47_s26, %s47_s26 }
  0x3d   :  { %p532_p1 = scmp.lt.s32.totalorder %s530_s2, %s526_s20 }
  0x3f   :  { %p533_p2 = por %p532_p1, %p531_p0 }
  0x41   :  { %p534_p3 = pnand %p533_p2, %p527_p13 }
  0x43   :  { %537 = shalt.err (!%p534_p3)
}
  0x44   :  { %49 = dma.hbm_to_vmem [thread:$0]  %s739_s3, 16, %s47_s26, [#allocation9]  }
  0x45   :  { %s596_s22 = smov [#allocation13]   ;;  %s538_s28 = scalar_lea.hbm %s741_s5, 16 }
  0x46   :  { %s68_s23 = sshll.u32 %s596_s22, 4  ;;  %p539_p4 = scmp.ne.s32.totalorder %s741_s5, %s538_s28  ;;  %s69_s23 = int_to_ptr.vmem [resolvable:$true] %s68_s23 }
  0x47   :  { %p542_p5 = scmp.lt.u32.totalorder %s538_s28, %s741_s5 }
  0x49   :  { %p544_p6 = pnand %p542_p5, %p539_p4 }
  0x4b   :  { %547 = shalt.err (!%p544_p6)
}
  0x4c   :  { %s548_s11 = scalar_lea.vmem %s69_s23, 16  ;;  %s552_s3 = scalar_lea.vmem %s69_s23, 32 }
  0x4d   :  { %p549_p7 = scmp.ne.s32.totalorder %s69_s23, %s548_s11  ;;  %p553_p8 = scmp.lt.s32.totalorder %s69_s23, %s69_s23 }
  0x4e   :  { %p554_p9 = scmp.lt.s32.totalorder %s552_s3, %s548_s11 }
  0x50   :  { %p555_p10 = por %p554_p9, %p553_p8 }
  0x52   :  { %p556_p11 = pnand %p555_p10, %p549_p7 }
  0x54   :  { %559 = shalt.err (!%p556_p11)
}
  0x55   :  { %71 = dma.hbm_to_vmem [thread:$0]  %s741_s5, 16, %s69_s23, [#allocation12]  }
  0x56   :  { %582 = dma.done.wait [#allocation6], 256  }
  0x57   :  { %583 = vsyncadd [#allocation6], 4294967040 }
  0x58   :  { %584 = dma.done.wait [#allocation9], 528  }
  0x59   :  { %585 = vsyncadd [#allocation9], 4294966768 }
  0x5a   :  { %586 = dma.done.wait [#allocation12], 1040  }
  0x5b   :  { %587 = vsyncadd [#allocation12], 4294966256  ;;  %vm91_vm0 = vcmask 261120   ;;  %v96_v0 = vld [vmem:[#allocation8] sm:$0xff]  ;;  %v97_v1 = vld [vmem:[#allocation8 + $0x8] sm:$0xff]  ;;  %v597_v20 = vmov 0.0   ;;  %v191_v21 = vlaneseq }
  0x5c   :  { %v98_v2 = vld [vmem:[#allocation8 + $0x10] sm:$0xff]  ;;  %v417_v3 = vpack.c.bf16 %v97_v1, %v96_v0  ;;  %v99_v4 = vld [vmem:[#allocation8 + $0x18] sm:$0xff]  ;;  %v236_v7 = vld [vmem:[#allocation11] sm:$0xff]  ;;  %93 = vst.msk [vmem:[#allocation2 + $0x8] sm:$0xff] %vm91_vm0, %v597_v20  ;;  %s208_s12 = smul.u32 2654435769, %s736_s0 }
  0x5d   :  { %v94_v5 = vld [vmem:[#allocation5] sm:$0xff]  ;;  %v421_v6 = vpack.c.bf16 %v99_v4, %v98_v2  ;;  %v239_v11 = vld [vmem:[#allocation11 + $0x18] sm:$0xff]  ;;  %v240_v14 = vld [vmem:[#allocation11 + $0x20] sm:$0xff]  ;;  %92 = vst.msk [vmem:[#allocation2] sm:$0xff] %vm91_vm0, %v597_v20  ;;  %v192_v22 = vshrl.u32 %v191_v21, 7  ;;  %v195_v24 = vand.u32 127, %v191_v21 }
  0x5e   :  { %395 = vmatprep.mubr.msk.f32.mxu0 %vm91_vm0, %v94_v5  ;;  %v237_v8 = vld [vmem:[#allocation11 + $0x8] sm:$0xff]  ;;  %v238_v9 = vld [vmem:[#allocation11 + $0x10] sm:$0xff]  ;;  %418 = vmatprep.subr.bf16.mxu0 %v417_v3  ;;  %v243_v18 = vld [vmem:[#allocation11 + $0x38] sm:$0xff]  ;;  %v209_v29 = vstv %s208_s12  ;;  %vm244_vm2 = vcmask 523264   ;;  %s598_s0 = smov [#allocation14]  }
  0x5f   :  { %v425_v10 = vpack.c.bf16 %v237_v8, %v236_v7  ;;  %420 = vmatpush3.bf16.msra.mxu0 %v417_v3  ;;  %v429_v12 = vpack.c.bf16 %v239_v11, %v238_v9  ;;  %v95_v13 = vld [vmem:[#allocation5 + $0x8] sm:$0xff]  ;;  %v241_v15 = vld [vmem:[#allocation11 + $0x28] sm:$0xff]  ;;  %v193_v23 = vadd.s32 8, %v192_v22  ;;  %v203_v25 = vmul.u32 64, %v192_v22  ;;  %v365_v45 = vld [vmem:[#allocation10] ss:$0 sm:$0xff] }
  0x60   :  { %422 = vmatprep.subr.bf16.mxu0 %v421_v6  ;;  %v433_v16 = vpack.c.bf16 %v241_v15, %v240_v14  ;;  %v242_v17 = vld [vmem:[#allocation11 + $0x30] sm:$0xff]  ;;  %v370_v1 = vld [vmem:[#allocation13] ss:$0 sm:$0xff]  ;;  %s351_s13 = sshll.u32 %s598_s0, 4  ;;  %s352_s13 = int_to_ptr.vmem [resolvable:$true] %s351_s13 }
  0x61   :  { %426 = vmatprep.subr.bf16.mxu1 %v425_v10  ;;  %v437_v19 = vpack.c.bf16 %v243_v18, %v242_v17  ;;  %v204_v26 = vmul.u32 64, %v193_v23  ;;  %v205_v27 = vadd.s32 %v203_v25, %v195_v24  ;;  %s560_s14 = scalar_lea.vmem %s352_s13, 256  ;;  %p565_p13 = scmp.lt.s32.totalorder %s352_s13, %s352_s13 }
  0x62   :  { %428 = vmatpush3.bf16.msra.mxu1 %v425_v10  ;;  %p561_p12 = scmp.ne.s32.totalorder %s352_s13, %s560_s14  ;;  %p566_p0 = scmp.lt.s32.totalorder %s560_s14, %s560_s14 }
  0x63   :  { %430 = vmatprep.subr.bf16.mxu1 %v429_v12  ;;  %424 = vmatpush3.bf16.msra.mxu0 %v421_v6  ;;  %v206_v28 = vadd.s32 %v204_v26, %v195_v24  ;;  %v210_v30 = vxor.u32 %v209_v29, %v205_v27  ;;  %v235_v59 = vld [vmem:[#allocation2 + $0x8] sm:$0xff] }
  0x64   :  { %v234_v60 = vld [vmem:[#allocation2] sm:$0xff]  ;;  %p567_p1 = por %p566_p0, %p565_p13 }
  0x65   :  { %v211_v31 = vxor.u32 %v209_v29, %v206_v28  ;;  %v212_v32 = vshrl.u32 %v210_v30, 16 }
  0x66   :  { %432 = vmatpush3.bf16.msra.mxu1 %v429_v12  ;;  %396 = vmatmul.mubr.msk.f32.vlgmr.msra.gmra.mrb[0].mxu0 %vm91_vm0, %v95_v13  ;;  %p568_p2 = pnand %p567_p1, %p561_p12 }
  0x67   :  { %434 = vmatprep.subr.bf16.mxu1 %v433_v16  ;;  %v213_v33 = vshrl.u32 %v211_v31, 16  ;;  %v214_v34 = vxor.u32 %v212_v32, %v210_v30 }
  0x69   :  { %v215_v35 = vxor.u32 %v213_v33, %v211_v31  ;;  %v216_v36 = vmul.u32 2146121005, %v214_v34 }
  0x6a   :  { %436 = vmatpush3.bf16.msra.mxu1 %v433_v16 }
  0x6b   :  { %438 = vmatprep.subr.bf16.mxu1 %v437_v19  ;;  %v217_v37 = vmul.u32 2146121005, %v215_v35  ;;  %v218_v38 = vshrl.u32 %v216_v36, 15 }
  0x6d   :  { %v219_v39 = vshrl.u32 %v217_v37, 15  ;;  %v220_v40 = vxor.u32 %v218_v38, %v216_v36 }
  0x6e   :  { %440 = vmatpush3.bf16.msra.mxu1 %v437_v19 }
  0x6f   :  { %v221_v41 = vxor.u32 %v219_v39, %v217_v37  ;;  %v222_v42 = vmul.u32 2221713035, %v220_v40 }
  0x71   :  { %v223_v43 = vmul.u32 2221713035, %v221_v41  ;;  %v224_v44 = vshrl.u32 %v222_v42, 16 }
  0x73   :  { %v225_v46 = vshrl.u32 %v223_v43, 16  ;;  %v226_v50 = vxor.u32 %v224_v44, %v222_v42 }
  0x75   :  { %v227_v52 = vxor.u32 %v225_v46, %v223_v43  ;;  %vm228_vm1 = vcmp.ge.u32.totalorder %v226_v50, 429496730 }
  0x77   :  { %vm229_vm3 = vcmp.ge.u32.totalorder %v227_v52, 429496730 }
 0x139   :  { %v397_v47 = vpop.f32.mrb[0].mxu0 }
 0x13a   :  { %v186_v48 = vadd.f32 %v397_v47, %v365_v45  ;;  %v180_v49 = vpop.f32.mrb[1].mxu0 }
 0x13b   :  { %v181_v51 = vadd.f32 %v365_v45, %v180_v49 }
 0x13c   :  { %v190_v53 = vmax.f32 %v186_v48, 0.0 }
 0x13d   :  { %v189_v54 = vmax.f32 %v181_v51, 0.0 }
 0x13e   :  { %v231_v55 = vmul.f32 1.1111112, %v190_v53 }
 0x13f   :  { %v230_v56 = vmul.f32 1.1111112, %v189_v54 }
 0x140   :  { %v233_v58 = vsel %vm229_vm3, %v231_v55, 0.0 }
 0x141   :  { %v232_v57 = vsel %vm228_vm1, %v230_v56, 0.0 }
 0x142   :  { %414 = vmatprep.mubr.msk.f32.mxu1 %vm244_vm2, %v232_v57 }
 0x143   :  { %415 = vmatmul.mubr.msk.f32.vlgmr.msra.gmra.mrb[0].mxu1 %vm244_vm2, %v233_v58 }
 0x216   :  { %v416_v61 = vpop.f32.mrb[0].mxu1 }
 0x217   :  { %v327_v62 = vadd.f32 %v416_v61, %v235_v59  ;;  %v317_v63 = vpop.f32.mrb[1].mxu1 }
 0x218   :  { %v326_v0 = vadd.f32 %v317_v63, %v234_v60 }
 0x219   :  { %329 = vst.msk [vmem:[#allocation2 + $0x8] sm:$0xff] %vm91_vm0, %v327_v62 }
 0x21a   :  { %328 = vst.msk [vmem:[#allocation2] sm:$0xff] %vm91_vm0, %v326_v0 }
 0x220   :  { %v334_v2 = vld [vmem:[#allocation2 + $0x8] sm:$0xff] }
 0x221   :  { %v333_v3 = vld [vmem:[#allocation2] sm:$0xff]  ;;  %v343_v4 = vadd.f32 %v370_v1, %v334_v2 }
 0x222   :  { %v342_v5 = vadd.f32 %v370_v1, %v333_v3 }
 0x223   :  { %345 = vst.msk [vmem:[#allocation14 + $0x8] sm:$0xff] %vm91_vm0, %v343_v4 }
 0x224   :  { %344 = vst.msk [vmem:[#allocation14] sm:$0xff] %vm91_vm0, %v342_v5 }
 0x225   :  { %571 = shalt.err (!%p568_p2)
}
 0x226   :  { %s572_s17 = scalar_lea.hbm %s742_s6, 256 }
 0x227   :  { %p573_p3 = scmp.ne.s32.totalorder %s742_s6, %s572_s17  ;;  %p576_p4 = scmp.lt.u32.totalorder %s572_s17, %s742_s6 }
 0x229   :  { %p578_p5 = pnand %p576_p4, %p573_p3 }
 0x22b   :  { %581 = shalt.err (!%p578_p5)
}
 0x22c   :  { %357 = dma.vmem_to_hbm [thread:$0]  %s352_s13, 256, %s742_s6, [#allocation7], %s592_s9, %s592_s9, %s593_s10  }
 0x22d   :  { %588 = dma.done.wait [#allocation7], 256  }
 0x22e   :  { %589 = vsyncadd [#allocation7], 4294967040 }
 0x22f   :  { %361 = vsyncpa [#allocation6], 1 }
 0x230   :  { %362 = vsyncpa [#allocation9], 1 }
 0x231   :  { %363 = vsyncpa [#allocation12], 1 }
 0x232   :  { %364 = vsyncpa [#allocation7], 1 }

</bundles_post_ra>
